<compile_context>
chip_gen: v6e
topology: v6e:2x2x1
jax: 0.10.0
libtpu: 0.0.40
codegen_flags: <defaults>
</compile_context>

<pallas_src>
import functools

import jax
import jax.numpy as jnp
from jax import lax
from jax.experimental import pallas as pl
from jax.experimental.pallas import tpu as pltpu

_LANES = 128
_SUBLANES = 8
_BLOCK_BYTES_TARGET = 2 * 1024 * 1024       # ~2 MiB per input block
_DEFAULT_SMOOTH = 1e-05


def _dice_sums_kernel(p_ref, t_ref, tp_ref, s_ref, acc_pt, acc_s, *,
                      tile_rows, rows_total, steps_per_split, needs_mask):
    """Accumulate sum(p*t) and sum(p)+sum(t) for one TensorCore split."""
    c = pl.program_id(0)            # core-split axis ("parallel")
    j = pl.program_id(1)            # sequential reduction axis ("arbitrary")

    @pl.when(j == 0)
    def _():
        acc_pt[...] = jnp.zeros_like(acc_pt)
        acc_s[...] = jnp.zeros_like(acc_s)

    p = p_ref[...].astype(jnp.float32)
    t = t_ref[...].astype(jnp.float32)

    if needs_mask:
        # Static Python branch: only emitted when the row range does not tile
        # evenly (partial edge block and/or clamped duplicate block).
        row_in_tile = lax.broadcasted_iota(jnp.int32, (tile_rows, _LANES), 0)
        global_row = (c * steps_per_split + j) * tile_rows + row_in_tile
        valid = global_row < rows_total
        p = jnp.where(valid, p, 0.0)
        t = jnp.where(valid, t, 0.0)

    # Keep running accumulators at full vreg shape (8, 128): the per-step
    # reduction over the leading axis is plain VPU adds; the XLU collapse to
    # a scalar happens once per split, in the finalize block below.
    pr = p.reshape(tile_rows // _SUBLANES, _SUBLANES, _LANES)
    tr = t.reshape(tile_rows // _SUBLANES, _SUBLANES, _LANES)
    acc_pt[...] += jnp.sum(pr * tr, axis=0)
    acc_s[...] += jnp.sum(pr + tr, axis=0)

    @pl.when(j == pl.num_programs(1) - 1)
    def _():
        tp_ref[...] = jnp.full((1, 1, 1), jnp.sum(acc_pt[...]), jnp.float32)
        s_ref[...] = jnp.full((1, 1, 1), jnp.sum(acc_s[...]), jnp.float32)


def _row_granularity(dtype):
    """Packed sublane tile height for this dtype (f32: 8, bf16: 16, int8: 32)."""
    itemsize = jnp.dtype(dtype).itemsize
    return _SUBLANES * max(1, 4 // itemsize)


def _binary_dice_loss_impl(predict, target, smooth=_DEFAULT_SMOOTH, *,
                           block_bytes=_BLOCK_BYTES_TARGET):
    assert predict.shape[0] == target.shape[0], \
        "predict & target batch size don't match"

    # Non-float inputs (bool / int masks) are upcast once in the wrapper.
    if not jnp.issubdtype(predict.dtype, jnp.floating):
        predict = predict.astype(jnp.float32)
    if not jnp.issubdtype(target.dtype, jnp.floating):
        target = target.astype(jnp.float32)

    # Flatten in native dtype (reshape of contiguous data is free).
    p_flat = jnp.ravel(predict)
    t_flat = jnp.ravel(target)
    n = p_flat.shape[0]

    # Lane-dense (rows, 128) view, rows rounded up to the packed-sublane
    # granularity of the narrower dtype.  The zero tail pad is sum-neutral
    # and is at most one packed row tile (a no-op for typical NCHW tensors).
    sub = max(_row_granularity(predict.dtype), _row_granularity(target.dtype))
    rows = max(sub, pl.cdiv(pl.cdiv(n, _LANES), sub) * sub)
    target_len = rows * _LANES
    pad = target_len - n
    if pad:
        p_flat = jnp.pad(p_flat, (0, pad))
        t_flat = jnp.pad(t_flat, (0, pad))

    # Block rows: ~block_bytes per input block, multiple of the granularity.
    itemsize = max(jnp.dtype(predict.dtype).itemsize,
                   jnp.dtype(target.dtype).itemsize)
    max_rows = max(sub, (block_bytes // (_LANES * itemsize)) // sub * sub)
    tile_rows = min(max_rows, rows)
    total_blocks = pl.cdiv(rows, tile_rows)

    # Split the reduction across 2 TensorCores when there is enough work
    # (v7x has 2 TCs per chip, each with its own HBM bandwidth; on 1-TC
    # v5e/v6e the extra axis just serializes).
    n_split = 2 if total_blocks >= 2 else 1
    steps = pl.cdiv(total_blocks, n_split)
    needs_mask = (n_split * steps * tile_rows) != rows

    p2 = p_flat.reshape(rows, _LANES)
    t2 = t_flat.reshape(rows, _LANES)

    def in_map(c, j):
        blk = c * steps + j
        # A split's trailing step can fall past the last block when the block
        # count is odd; clamp it and let the in-kernel mask zero it out.
        return (jnp.minimum(blk, total_blocks - 1), 0)

    kernel = functools.partial(
        _dice_sums_kernel,
        tile_rows=tile_rows,
        rows_total=rows,
        steps_per_split=steps,
        needs_mask=needs_mask,
    )

    tp_parts, s_parts = pl.pallas_call(
        kernel,
        out_shape=(
            jax.ShapeDtypeStruct((n_split, 1, 1), jnp.float32),
            jax.ShapeDtypeStruct((n_split, 1, 1), jnp.float32),
        ),
        grid_spec=pltpu.PrefetchScalarGridSpec(
            num_scalar_prefetch=0,
            grid=(n_split, steps),
            in_specs=[
                pl.BlockSpec((tile_rows, _LANES), in_map),
                pl.BlockSpec((tile_rows, _LANES), in_map),
            ],
            out_specs=(
                pl.BlockSpec((1, 1, 1), lambda c, j: (c, 0, 0)),
                pl.BlockSpec((1, 1, 1), lambda c, j: (c, 0, 0)),
            ),
            scratch_shapes=[
                pltpu.VMEM((_SUBLANES, _LANES), jnp.float32),
                pltpu.VMEM((_SUBLANES, _LANES), jnp.float32),
            ],
        ),
        compiler_params=pltpu.CompilerParams(
            dimension_semantics=("parallel", "arbitrary"),
            vmem_limit_bytes=32 * 1024 * 1024,
        ),
    )(p2, t2)

    # Combine per-core partial sums and apply the smooth / dice formula
    # (tiny scalar math; keeps `smooth` a regular runtime argument).
    tp = jnp.sum(tp_parts)
    s = jnp.sum(s_parts)
    num = tp + smooth
    den = s + smooth
    loss = 1.0 - 2.0 * num / den
    # PyTorch returns shape (1,) because of the dim=1 sum over a (1, N) view.
    return jnp.reshape(loss, (1,)).astype(jnp.float32)


binary_dice_loss = jax.jit(_binary_dice_loss_impl)


def _reference(predict, target, smooth=_DEFAULT_SMOOTH):
    p = jnp.ravel(predict).astype(jnp.float32)[None, :]
    t = jnp.ravel(target).astype(jnp.float32)[None, :]
    num = jnp.sum(p * t, axis=1) + smooth
    den = jnp.sum(p, axis=1) + jnp.sum(t, axis=1) + smooth
    return 1.0 - 2.0 * num / den


if __name__ == "__main__":
    key = jax.random.PRNGKey(0)
    k1, k2, k3, k4, k5, k6 = jax.random.split(key, 6)

    # 1) NCHW float32 probabilities vs binary targets (single-block fast path).
    p1 = jax.nn.sigmoid(jax.random.normal(k1, (2, 4, 16, 16), jnp.float32))
    t1 = (jax.random.uniform(k2, (2, 4, 16, 16)) > 0.5).astype(jnp.float32)
    out1 = jax.block_until_ready(binary_dice_loss(p1, t1))
    ref1 = _reference(p1, t1)
    assert out1.shape == (1,)
    assert jnp.allclose(out1, ref1, rtol=1e-5, atol=1e-6), (out1, ref1)

    # 2) bf16 inputs streamed in native dtype (half the HBM bytes read).
    p2 = jax.nn.sigmoid(
        jax.random.normal(k3, (2, 8, 32, 32), jnp.float32)).astype(jnp.bfloat16)
    t2 = (jax.random.uniform(k4, (2, 8, 32, 32)) > 0.5).astype(jnp.bfloat16)
    out2 = jax.block_until_ready(binary_dice_loss(p2, t2))
    ref2 = _reference(p2, t2)
    assert jnp.allclose(out2, ref2, rtol=1e-4, atol=1e-5), (out2, ref2)

    # 3) Ragged size with a tiny block budget to exercise the multi-block,
    #    2-way-split, partial-edge-block + clamped-duplicate masking path
    #    without needing a large input.
    small_blk = jax.jit(functools.partial(_binary_dice_loss_impl,
                                          block_bytes=8 * 1024))
    p3 = jax.nn.sigmoid(jax.random.normal(k5, (2, 2521), jnp.float32))
    t3 = (jax.random.uniform(k6, (2, 2521)) > 0.5).astype(jnp.float32)
    out3 = jax.block_until_ready(small_blk(p3, t3))
    ref3 = _reference(p3, t3)
    assert jnp.allclose(out3, ref3, rtol=1e-5, atol=1e-6), (out3, ref3)

    print("KERNEL_OK")
</pallas_src>

<mosaic_0001>
module attributes {stable_mosaic.version = 11 : i64} {
  func.func @_dice_sums_kernel(%arg0: i32, %arg1: i32, %arg2: memref<16x128xf32, #tpu.memory_space<vmem>>, %arg3: memref<16x128xf32, #tpu.memory_space<vmem>>, %arg4: memref<1x1x1xf32, #tpu.memory_space<vmem>>, %arg5: memref<1x1x1xf32, #tpu.memory_space<vmem>>, %arg6: memref<8x128xf32, #tpu.memory_space<vmem>>, %arg7: memref<8x128xf32, #tpu.memory_space<vmem>>) attributes {dimension_semantics = [#tpu.dimension_semantics<parallel>, #tpu.dimension_semantics<arbitrary>], iteration_bounds = array<i64: 1, 1>, scalar_prefetch = 0 : i64, scratch_operands = 2 : i64, tpu.core_type = #tpu.core_type<tc>, window_params = [{transform_indices = @transform_0, window_bounds = array<i64: 16, 128>}, {transform_indices = @transform_1, window_bounds = array<i64: 16, 128>}, {transform_indices = @transform_2, window_bounds = array<i64: 1, 1, 1>}, {transform_indices = @transform_3, window_bounds = array<i64: 1, 1, 1>}]} {
    %c0_i32 = arith.constant 0 : i32
    %0 = arith.cmpi eq, %arg1, %c0_i32 : i32
    %1 = arith.extui %0 : i1 to i32
    %c0_i32_0 = arith.constant 0 : i32
    %2 = arith.cmpi ne, %1, %c0_i32_0 : i32
    scf.if %2 {
      %cst_15 = arith.constant 0.000000e+00 : f32
      %20 = vector.broadcast %cst_15 : f32 to vector<8x128xf32>
      %c0_16 = arith.constant 0 : index
      %c0_17 = arith.constant 0 : index
      %21 = vector.load %arg6[%c0_16, %c0_17] : memref<8x128xf32, #tpu.memory_space<vmem>>, vector<8x128xf32>
      tpu.vector_store %arg6[%c0_16, %c0_17], %20 {strides = array<i32>} : memref<8x128xf32, #tpu.memory_space<vmem>>, vector<8x128xf32>,
      %cst_18 = arith.constant 0.000000e+00 : f32
      %22 = vector.broadcast %cst_18 : f32 to vector<8x128xf32>
      %c0_19 = arith.constant 0 : index
      %c0_20 = arith.constant 0 : index
      %23 = vector.load %arg7[%c0_19, %c0_20] : memref<8x128xf32, #tpu.memory_space<vmem>>, vector<8x128xf32>
      tpu.vector_store %arg7[%c0_19, %c0_20], %22 {strides = array<i32>} : memref<8x128xf32, #tpu.memory_space<vmem>>, vector<8x128xf32>,
    } else {
    }
    %c0 = arith.constant 0 : index
    %c0_1 = arith.constant 0 : index
    %3 = vector.load %arg2[%c0, %c0_1] : memref<16x128xf32, #tpu.memory_space<vmem>>, vector<16x128xf32>
    %c0_2 = arith.constant 0 : index
    %c0_3 = arith.constant 0 : index
    %4 = vector.load %arg3[%c0_2, %c0_3] : memref<16x128xf32, #tpu.memory_space<vmem>>, vector<16x128xf32>
    %5 = vector.shape_cast %3 : vector<16x128xf32> to vector<2x8x128xf32>
    %6 = vector.shape_cast %4 : vector<16x128xf32> to vector<2x8x128xf32>
    %c0_4 = arith.constant 0 : index
    %c0_5 = arith.constant 0 : index
    %7 = vector.load %arg6[%c0_4, %c0_5] : memref<8x128xf32, #tpu.memory_space<vmem>>, vector<8x128xf32>
    %8 = arith.mulf %5, %6 : vector<2x8x128xf32>
    %cst = arith.constant dense<0.000000e+00> : vector<8x128xf32>
    %9 = vector.multi_reduction <add>, %8, %cst [0] : vector<2x8x128xf32> to vector<8x128xf32>
    %10 = arith.addf %7, %9 : vector<8x128xf32>
    %c0_6 = arith.constant 0 : index
    %c0_7 = arith.constant 0 : index
    %11 = vector.load %arg6[%c0_6, %c0_7] : memref<8x128xf32, #tpu.memory_space<vmem>>, vector<8x128xf32>
    tpu.vector_store %arg6[%c0_6, %c0_7], %10 {strides = array<i32>} : memref<8x128xf32, #tpu.memory_space<vmem>>, vector<8x128xf32>,
    %c0_8 = arith.constant 0 : index
    %c0_9 = arith.constant 0 : index
    %12 = vector.load %arg7[%c0_8, %c0_9] : memref<8x128xf32, #tpu.memory_space<vmem>>, vector<8x128xf32>
    %13 = arith.addf %5, %6 : vector<2x8x128xf32>
    %cst_10 = arith.constant dense<0.000000e+00> : vector<8x128xf32>
    %14 = vector.multi_reduction <add>, %13, %cst_10 [0] : vector<2x8x128xf32> to vector<8x128xf32>
    %15 = arith.addf %12, %14 : vector<8x128xf32>
    %c0_11 = arith.constant 0 : index
    %c0_12 = arith.constant 0 : index
    %16 = vector.load %arg7[%c0_11, %c0_12] : memref<8x128xf32, #tpu.memory_space<vmem>>, vector<8x128xf32>
    tpu.vector_store %arg7[%c0_11, %c0_12], %15 {strides = array<i32>} : memref<8x128xf32, #tpu.memory_space<vmem>>, vector<8x128xf32>,
    %c0_i32_13 = arith.constant 0 : i32
    %17 = arith.cmpi eq, %arg1, %c0_i32_13 : i32
    %18 = arith.extui %17 : i1 to i32
    %c0_i32_14 = arith.constant 0 : i32
    %19 = arith.cmpi ne, %18, %c0_i32_14 : i32
    scf.if %19 {
      %c0_15 = arith.constant 0 : index
      %c0_16 = arith.constant 0 : index
      %20 = vector.load %arg6[%c0_15, %c0_16] : memref<8x128xf32, #tpu.memory_space<vmem>>, vector<8x128xf32>
      %21 = vector.shape_cast %20 : vector<8x128xf32> to vector<1x8x128xf32>
      %cst_17 = arith.constant dense<0.000000e+00> : vector<1xf32>
      %22 = vector.multi_reduction <add>, %21, %cst_17 [1, 2] : vector<1x8x128xf32> to vector<1xf32>
      %23 = vector.shape_cast %22 : vector<1xf32> to vector<1x1x1xf32>
      %24 = vector.extract %23[0, 0, 0] : f32 from vector<1x1x1xf32>
      %25 = vector.broadcast %24 : f32 to vector<1x1x1xf32>
      %c0_18 = arith.constant 0 : index
      %c0_19 = arith.constant 0 : index
      %c0_20 = arith.constant 0 : index
      %26 = vector.load %arg4[%c0_18, %c0_19, %c0_20] : memref<1x1x1xf32, #tpu.memory_space<vmem>>, vector<1x1x1xf32>
      tpu.vector_store %arg4[%c0_18, %c0_19, %c0_20], %25 {strides = array<i32>} : memref<1x1x1xf32, #tpu.memory_space<vmem>>, vector<1x1x1xf32>,
      %c0_21 = arith.constant 0 : index
      %c0_22 = arith.constant 0 : index
      %27 = vector.load %arg7[%c0_21, %c0_22] : memref<8x128xf32, #tpu.memory_space<vmem>>, vector<8x128xf32>
      %28 = vector.shape_cast %27 : vector<8x128xf32> to vector<1x8x128xf32>
      %cst_23 = arith.constant dense<0.000000e+00> : vector<1xf32>
      %29 = vector.multi_reduction <add>, %28, %cst_23 [1, 2] : vector<1x8x128xf32> to vector<1xf32>
      %30 = vector.shape_cast %29 : vector<1xf32> to vector<1x1x1xf32>
      %31 = vector.extract %30[0, 0, 0] : f32 from vector<1x1x1xf32>
      %32 = vector.broadcast %31 : f32 to vector<1x1x1xf32>
      %c0_24 = arith.constant 0 : index
      %c0_25 = arith.constant 0 : index
      %c0_26 = arith.constant 0 : index
      %33 = vector.load %arg5[%c0_24, %c0_25, %c0_26] : memref<1x1x1xf32, #tpu.memory_space<vmem>>, vector<1x1x1xf32>
      tpu.vector_store %arg5[%c0_24, %c0_25, %c0_26], %32 {strides = array<i32>} : memref<1x1x1xf32, #tpu.memory_space<vmem>>, vector<1x1x1xf32>,
    } else {
    }
    return
  }
  func.func @transform_0(%arg0: i32, %arg1: i32) -> (i32, i32) {
    %c1_i32 = arith.constant 1 : i32
    %0 = arith.muli %arg0, %c1_i32 : i32
    %1 = arith.addi %0, %arg1 : i32
    %c0_i32 = arith.constant 0 : i32
    %2 = arith.minsi %1, %c0_i32 : i32
    %c0_i32_0 = arith.constant 0 : i32
    %c0_i32_1 = arith.constant 0 : i32
    return %2, %c0_i32_0 : i32, i32
  }
  func.func @transform_1(%arg0: i32, %arg1: i32) -> (i32, i32) {
    %c1_i32 = arith.constant 1 : i32
    %0 = arith.muli %arg0, %c1_i32 : i32
    %1 = arith.addi %0, %arg1 : i32
    %c0_i32 = arith.constant 0 : i32
    %2 = arith.minsi %1, %c0_i32 : i32
    %c0_i32_0 = arith.constant 0 : i32
    %c0_i32_1 = arith.constant 0 : i32
    return %2, %c0_i32_0 : i32, i32
  }
  func.func @transform_2(%arg0: i32, %arg1: i32) -> (i32, i32, i32) {
    %c0_i32 = arith.constant 0 : i32
    %c0_i32_0 = arith.constant 0 : i32
    %c0_i32_1 = arith.constant 0 : i32
    return %arg0, %c0_i32, %c0_i32_0 : i32, i32, i32
  }
  func.func @transform_3(%arg0: i32, %arg1: i32) -> (i32, i32, i32) {
    %c0_i32 = arith.constant 0 : i32
    %c0_i32_0 = arith.constant 0 : i32
    %c0_i32_1 = arith.constant 0 : i32
    return %arg0, %c0_i32, %c0_i32_0 : i32, i32, i32
  }
}

</mosaic_0001>

<bundles_post_ra>
// kernel: _binary_dice_loss_impl.1
= control target key start
LH: loop header
LB: loop body
LE: loop exit
PB: predicated region body
PF: predicated region fallthrough
CT: control target
= control target key end

     0   :  { %9 = vsyncpa [#allocation5], 0  ;;  %s261_s0 = inlined_call_operand.vmem [shape: f32[16,128], index: 0, kind: input, shape index: {}]   ;;  %s262_s1 = inlined_call_operand.vmem [shape: f32[16,128], index: 1, kind: input, shape index: {}]   ;;  %s263_s2 = inlined_call_operand.hbm [shape: f32[1,1,1], index: 2, kind: output, shape index: {0}]   ;;  %s264_s3 = inlined_call_operand.hbm [shape: f32[1,1,1], index: 3, kind: output, shape index: {1}]  }
   0x1   :  { %v85_v0 = vld [vmem:[%s261_s0] sm:$0xff]  ;;  %v86_v1 = vld [vmem:[%s261_s0 + $0x8] sm:$0xff] }
   0x2   :  { %v87_v2 = vld [vmem:[%s262_s1] sm:$0xff]  ;;  %v88_v3 = vld [vmem:[%s262_s1 + $0x8] sm:$0xff] }
   0x3   :  { %v90_v4 = vmul.f32 %v87_v2, %v85_v0 }
   0x4   :  { %10 = vsyncpa [#allocation7], 0  ;;  %v91_v5 = vmul.f32 %v88_v3, %v86_v1  ;;  %v96_v6 = vadd.f32 %v87_v2, %v85_v0  ;;  %v97_v7 = vadd.f32 %v88_v3, %v86_v1  ;;  %s219_s0 = smov [#allocation4]   ;;  %vm115_vm0 = vcmask 0   ;;  %s220_s21 = smov [#allocation6]  }
   0x5   :  { %s135_s1 = sshll.u32 %s219_s0, 4  ;;  %s145_s22 = sshll.u32 %s220_s21, 4  ;;  %s136_s1 = int_to_ptr.vmem [resolvable:$true] %s135_s1  ;;  %s146_s22 = int_to_ptr.vmem [resolvable:$true] %s145_s22 }
   0x6   :  { %v92_v8 = vadd.f32 %v91_v5, %v90_v4  ;;  %v98_v9 = vadd.f32 %v97_v7, %v96_v6  ;;  %s175_s23 = scalar_lea.vmem %s136_s1, 16  ;;  %s179_s24 = scalar_lea.vmem %s136_s1, 32 }
   0x7   :  { %p176_p0 = scmp.ne.s32.totalorder %s136_s1, %s175_s23  ;;  %p180_p1 = scmp.lt.s32.totalorder %s136_s1, %s136_s1 }
   0x8   :  { %105 = vadd.xlane.f32.xlu0 %v92_v8  ;;  %p181_p2 = scmp.lt.s32.totalorder %s179_s24, %s175_s23 }
   0xa   :  { %p182_p3 = por %p181_p2, %p180_p1 }
   0xc   :  { %118 = vadd.xlane.f32.xlu0 %v98_v9  ;;  %p183_p4 = pnand %p182_p3, %p176_p0 }
  0x91   :  { %v106_v10 = vpop.xlane.xlu0 %105 }
  0x92   :  { %v107_v11 = vrot.slane %v106_v10, 4 }
  0x94   :  { %v108_v12 = vadd.f32 %v107_v11, %v106_v10 }
  0x95   :  { %v119_v13 = vpop.xlane.xlu0 %118 }
  0x96   :  { %v109_v14 = vrot.slane %v108_v12, 2  ;;  %v120_v15 = vrot.slane %v119_v13, 4 }
  0x98   :  { %v121_v16 = vadd.f32 %v120_v15, %v119_v13  ;;  %v110_v17 = vadd.f32 %v109_v14, %v108_v12 }
  0x9a   :  { %v122_v18 = vrot.slane %v121_v16, 2  ;;  %v111_v19 = vrot.slane %v110_v17, 1 }
  0x9c   :  { %v123_v20 = vadd.f32 %v122_v18, %v121_v16  ;;  %v112_v21 = vadd.f32 %v111_v19, %v110_v17 }
  0x9e   :  { %169 = vpush %v112_v21  ;;  %v124_v22 = vrot.slane %v123_v20, 1 }
  0xa0   :  { %v125_v23 = vadd.f32 %v124_v22, %v123_v20 }
  0xa2   :  { %171 = vpush %v125_v23 }
  0xcf   :  { %s170_s20 = spop %169 }
  0xd0   :  { %v114_v24 = vstv %s170_s20 }
  0xd1   :  { %116 = vst.msk [vmem:[#allocation4] sm:$0x1] %vm115_vm0, %v114_v24 }
  0xd2   :  { %186 = shalt.err (!%p183_p4)
}
  0xd3   :  { %138 = dma.vmem_to_hbm [thread:$0]  %s136_s1, 16, %s263_s2, [#allocation5]  }
  0xd4   :  { %s172_s27 = spop %171  ;;  %s195_s28 = scalar_lea.vmem %s146_s22, 16 }
  0xd5   :  { %v127_v25 = vstv %s172_s27  ;;  %p196_p5 = scmp.ne.s32.totalorder %s146_s22, %s195_s28  ;;  %s199_s29 = scalar_lea.vmem %s146_s22, 32 }
  0xd6   :  { %128 = vst.msk [vmem:[#allocation6] sm:$0x1] %vm115_vm0, %v127_v25  ;;  %p200_p6 = scmp.lt.s32.totalorder %s146_s22, %s146_s22  ;;  %p201_p7 = scmp.lt.s32.totalorder %s199_s29, %s195_s28 }
  0xd8   :  { %p202_p8 = por %p201_p7, %p200_p6 }
  0xda   :  { %p203_p9 = pnand %p202_p8, %p196_p5 }
  0xdc   :  { %206 = shalt.err (!%p203_p9)
}
  0xdd   :  { %148 = dma.vmem_to_hbm [thread:$0]  %s146_s22, 16, %s264_s3, [#allocation7]  }
  0xde   :  { %215 = dma.done.wait [#allocation5], 16  }
  0xdf   :  { %216 = vsyncadd [#allocation5], 4294967280 }
  0xe0   :  { %217 = dma.done.wait [#allocation7], 16  }
  0xe1   :  { %218 = vsyncadd [#allocation7], 4294967280 }
  0xe2   :  { %155 = vsyncpa [#allocation5], 1 }
  0xe3   :  { %156 = vsyncpa [#allocation7], 1 }

</bundles_post_ra>
